<compile_context>
chip_gen: v6e
topology: v6e:2x2x1
jax: 0.10.0
libtpu: 0.0.40
codegen_flags: <defaults>
</compile_context>

<pallas_src>
import math

import jax
import jax.numpy as jnp
from jax.experimental import pallas as pl
from jax.experimental.pallas import tpu as pltpu


def _add_pe_kernel(x_ref, pe_ref, o_ref):
    # x_ref / o_ref : (rows_tile, lanes) tile of one batch row (leading batch
    #                 dim squeezed away via pl.Squeezed()).
    # pe_ref        : (1, lanes) positional-encoding row for this batch index,
    #                 broadcast over the sublane (rows) axis by the VPU add.
    o_ref[...] = x_ref[...] + pe_ref[...]


def make_positional_encoding(d_model: int, max_len: int = 5000) -> jnp.ndarray:
    """Build the pe buffer exactly as the PyTorch __init__ does.
    (Even d_model assumed; PyTorch itself errors for odd d_model.)"""
    position = jnp.arange(0, max_len, dtype=jnp.float32)[:, None]          # (max_len, 1)
    div_term = jnp.exp(
        jnp.arange(0, d_model, 2, dtype=jnp.float32) * (-math.log(10000.0) / d_model)
    )
    pe = jnp.zeros((max_len, d_model), dtype=jnp.float32)
    pe = pe.at[:, 0::2].set(jnp.sin(position * div_term))
    pe = pe.at[:, 1::2].set(jnp.cos(position * div_term)[:, : d_model // 2])
    # unsqueeze(0).transpose(0, 1) -> (max_len, 1, d_model)
    return pe[:, None, :]


def _pick_row_tile(total_rows: int, lane_width: int, itemsize: int,
                   target_tile_bytes: int) -> int:
    """Rows per grid step: large enough to keep the HBM stream saturated
    (>= (512,128)-equivalent bytes per step), small enough that double-buffered
    in+out tiles fit comfortably in scoped VMEM on v5e/v6e/v7x."""
    rows = target_tile_bytes // max(1, lane_width * itemsize)
    rows = max(8, (rows // 8) * 8)           # keep (8, 128) block divisibility
    if rows >= total_rows:
        return total_rows                    # full dim is always a legal block
    return rows


def _pallas_broadcast_add(x3: jnp.ndarray, pe3: jnp.ndarray,
                          target_tile_bytes: int) -> jnp.ndarray:
    """out[b, r, l] = x3[b, r, l] + pe3[b, 0, l], tiled over (batch, row-tile)."""
    B, R, L = x3.shape
    itemsize = x3.dtype.itemsize
    tr = _pick_row_tile(R, L, itemsize, target_tile_bytes)
    grid = (B, pl.cdiv(R, tr))

    cost = pl.CostEstimate(
        flops=B * R * L,
        transcendentals=0,
        bytes_accessed=(2 * B * R * L + B * L) * itemsize,
    )

    return pl.pallas_call(
        _add_pe_kernel,
        out_shape=jax.ShapeDtypeStruct((B, R, L), x3.dtype),
        grid_spec=pltpu.PrefetchScalarGridSpec(
            num_scalar_prefetch=0,
            grid=grid,
            in_specs=[
                # x tile for (batch b, row-tile r); batch dim squeezed -> 2-D tile.
                pl.BlockSpec((pl.Squeezed(), tr, L), lambda b, r: (b, r, 0)),
                # single pe row for batch b, re-used (VMEM-resident) for every row tile.
                pl.BlockSpec((pl.Squeezed(), 1, L), lambda b, r: (b, 0, 0)),
            ],
            out_specs=pl.BlockSpec((pl.Squeezed(), tr, L), lambda b, r: (b, r, 0)),
        ),
        compiler_params=pltpu.CompilerParams(
            # both axes independent -> shard across v7x's two TensorCores;
            # measured-neutral (harmless) on single-core v5e/v6e.
            dimension_semantics=("parallel", "parallel"),
        ),
        cost_estimate=cost,
        # out has identical shape/dtype to x -> write in place, halve peak HBM footprint.
        input_output_aliases={0: 0},
    )(x3, pe3)


def positional_encoding_forward(
    x: jnp.ndarray,
    pe: jnp.ndarray,
    *,
    target_tile_bytes: int = 2 << 20,   # ~2 MiB/tile -> ~8 MiB double-buffered VMEM
    min_pallas_bytes: int = 0,          # set to e.g. 4 << 20 in real deployments
) -> jnp.ndarray:
    """x: (B, S, D); pe: (max_len, 1, D).  out = x + pe[:B, :]  (literal PyTorch forward).

    # TODO(synk): if callers actually pass seq-first (S, B, D) tensors, the
    # intended op indexes pe by *position*; key the pe index_map on the row
    # grid axis instead of the batch axis in that case.
    """
    B, S, D = x.shape
    assert pe.shape[0] >= B and pe.shape[2] == D

    # Tiny tensors: the custom-call + DMA setup overhead dwarfs the add;
    # let XLA fuse the broadcast-add into neighboring ops instead.
    if x.size * x.dtype.itemsize < min_pallas_bytes:
        return x + pe[:B, :].astype(x.dtype)

    pe_rows = pe[:B, 0, :].astype(x.dtype)                     # (B, D)

    if D % 128 != 0:
        # Lane-dense fast path: D is the lane axis; D not a multiple of 128
        # would make every store a masked (partial-lane) vst.  Fold the seq
        # axis into the lane axis so the last dim is a multiple of 128 and
        # tile pe periodically to match the fold.
        L = D * 128 // math.gcd(D, 128)                        # lcm(D, 128)
        if (S * D) % L == 0 and S * D >= L:
            R = (S * D) // L
            x3 = x.reshape(B, R, L)
            pe3 = jnp.tile(pe_rows, (1, L // D))[:, None, :]   # (B, 1, L)
            out = _pallas_broadcast_add(x3, pe3, target_tile_bytes)
            return out.reshape(B, S, D)

    # Natural layout: (B, S, D) tiled over (batch, seq-tile); lane-dense
    # whenever D is a multiple of 128.
    pe3 = pe_rows[:, None, :]                                  # (B, 1, D)
    return _pallas_broadcast_add(x, pe3, target_tile_bytes)


if __name__ == "__main__":
    B, S, D = 2, 8, 32
    max_len = 5000

    key = jax.random.PRNGKey(0)
    x = jax.random.normal(key, (B, S, D), dtype=jnp.float32)

    pe = make_positional_encoding(D, max_len)   # deterministic "parameter" buffer

    # Reference (plain JAX, mirrors the PyTorch broadcast exactly); computed
    # before the kernel call since the kernel aliases its output onto x.
    ref = x + pe[:B, :]                         # (B, 1, D) broadcast over seq axis

    fwd = jax.jit(positional_encoding_forward)
    out = fwd(x, pe)
    out = jax.block_until_ready(out)

    assert out.shape == (B, S, D)
    assert jnp.allclose(out, ref, atol=1e-6), "mismatch vs reference"

    print("KERNEL_OK")
</pallas_src>

<mosaic_0001>
module attributes {stable_mosaic.version = 11 : i64} {
  func.func @_add_pe_kernel(%arg0: i32, %arg1: i32, %arg2: memref<1x2x128xf32, #tpu.memory_space<vmem>>, %arg3: memref<1x1x128xf32, #tpu.memory_space<vmem>>, %arg4: memref<1x2x128xf32, #tpu.memory_space<vmem>>) attributes {dimension_semantics = [#tpu.dimension_semantics<parallel>, #tpu.dimension_semantics<parallel>], iteration_bounds = array<i64: 2, 1>, scalar_prefetch = 0 : i64, scratch_operands = 0 : i64, tpu.core_type = #tpu.core_type<tc>, window_params = [{transform_indices = @transform_0, window_bounds = array<i64: 1, 2, 128>}, {transform_indices = @transform_1, window_bounds = array<i64: 1, 1, 128>}, {transform_indices = @transform_2, window_bounds = array<i64: 1, 2, 128>}]} {
    %c0 = arith.constant 0 : index
    %c0_0 = arith.constant 0 : index
    %c0_1 = arith.constant 0 : index
    %0 = vector.load %arg2[%c0, %c0_0, %c0_1] : memref<1x2x128xf32, #tpu.memory_space<vmem>>, vector<1x2x128xf32>
    %1 = vector.shape_cast %0 : vector<1x2x128xf32> to vector<2x128xf32>
    %c0_2 = arith.constant 0 : index
    %c0_3 = arith.constant 0 : index
    %c0_4 = arith.constant 0 : index
    %2 = vector.load %arg3[%c0_2, %c0_3, %c0_4] : memref<1x1x128xf32, #tpu.memory_space<vmem>>, vector<1x1x128xf32>
    %3 = vector.shape_cast %2 : vector<1x1x128xf32> to vector<1x128xf32>
    %4 = vector.broadcast %3 : vector<1x128xf32> to vector<2x128xf32>
    %5 = arith.addf %1, %4 : vector<2x128xf32>
    %c0_5 = arith.constant 0 : index
    %c0_6 = arith.constant 0 : index
    %c0_7 = arith.constant 0 : index
    %6 = vector.load %arg4[%c0_5, %c0_6, %c0_7] : memref<1x2x128xf32, #tpu.memory_space<vmem>>, vector<1x2x128xf32>
    %7 = vector.shape_cast %6 : vector<1x2x128xf32> to vector<2x128xf32>
    %8 = vector.shape_cast %5 : vector<2x128xf32> to vector<1x2x128xf32>
    tpu.vector_store %arg4[%c0_5, %c0_6, %c0_7], %8 {strides = array<i32>} : memref<1x2x128xf32, #tpu.memory_space<vmem>>, vector<1x2x128xf32>,
    return
  }
  func.func @transform_0(%arg0: i32, %arg1: i32) -> (i32, i32, i32) {
    %c0_i32 = arith.constant 0 : i32
    %c0_i32_0 = arith.constant 0 : i32
    return %arg0, %arg1, %c0_i32 : i32, i32, i32
  }
  func.func @transform_1(%arg0: i32, %arg1: i32) -> (i32, i32, i32) {
    %c0_i32 = arith.constant 0 : i32
    %c0_i32_0 = arith.constant 0 : i32
    %c0_i32_1 = arith.constant 0 : i32
    return %arg0, %c0_i32, %c0_i32_0 : i32, i32, i32
  }
  func.func @transform_2(%arg0: i32, %arg1: i32) -> (i32, i32, i32) {
    %c0_i32 = arith.constant 0 : i32
    %c0_i32_0 = arith.constant 0 : i32
    return %arg0, %arg1, %c0_i32 : i32, i32, i32
  }
}

</mosaic_0001>

<bundles_post_ra>
// kernel: positional_encoding_forward.1
= control target key start
LH: loop header
LB: loop body
LE: loop exit
PB: predicated region body
PF: predicated region fallthrough
CT: control target
= control target key end

     0   :  { %s350_s9 = smov 0   ;;  %s352_s10 = smov 0   ;;  %s369_s0 = inlined_call_operand.vmem [shape: f32[2,2,128], index: 0, kind: input, shape index: {}, may-alias: {0,2}]   ;;  %s370_s1 = inlined_call_operand.vmem [shape: f32[2,1,128], index: 1, kind: input, shape index: {}]   ;;  %s371_s2 = inlined_call_operand.vmem [shape: f32[2,2,128], index: 2, kind: output, shape index: {}, may-alias: {0,2}]  }
   0x1   :  { %s331_s11 = smov 0  }
   0x2 LB: > { %s24_s12 = sadd.s32 1, %s329_s10  ;;  %p281_p0 = scmp.ge.s32.totalorder %s333_s11, 1  ;;  %s333_s11 = sphi %s331_s11, %s12_s11   ;;  %s329_s10 = sphi %s352_s10, %s373_s10   ;;  %s325_s9 = sphi %s350_s9, %s372_s9  }
   0x3   : > { %p26_p1 = scmp.ge.s32.totalorder %s24_s12, 2  ;;  %p138_p2 = scmp.lt.s32.totalorder %s333_s11, 3 }
   0x5   : > { %s375_s12 = smov (%p26_p1, %s24_s12), 0  ;;  %p139_p3 = pnand %p281_p0, %p138_p2 }
   0x6   : > { %p167_p4 = scmp.lt.s32.totalorder (!%p139_p3), %s325_s9, 1 }
   0x7   : > { %142 = sbr.rel (%p139_p3) target bundleno = 19 (0x13), region = 28 }
   0xc   : > { %s377_s9 = smov (!%p167_p4, %s325_s9), 1 }
   0xd   : > { %s282_s13 = sshll.u32 %s377_s9, 1  ;;  %s176_s16 = scalar_lea.vmem %s370_s1, %s377_s9 }
   0xe   : > { %s173_s19 = scalar_lea.vmem %s369_s0, %s282_s13  ;;  %v284_v0 = vld [vmem:[%s176_s16] ss:$0 sm:$0xff]  ;;  %s183_s22 = scalar_lea.vmem %s371_s2, %s282_s13 }
   0xf   : > { %v184_v1 = vld [vmem:[%s173_s19] sm:$0x3] }
  0x10   : > { %v192_v2 = vadd.f32 %v284_v0, %v184_v1 }
  0x12   : > { %193 = vst [vmem:[%s183_s22] sm:$0x3] %v192_v2 }
  0x13 PF: > { %s12_s11 = sadd.s32 1, %s333_s11   ;;  %s372_s9 = smov %s329_s10 }
  0x14   : > { %p9_p5 = scmp.ge.s32.totalorder %s12_s11, 4   ;;  %s373_s10 = smov %s375_s12 }
  0x16   :  { %11 = sbr.rel (!%p9_p5) target bundleno = 2 (0x2), region = 61 }

</bundles_post_ra>
